<compile_context>
chip_gen: v7x
topology: tpu7x:2x2x1
jax: 0.10.0
libtpu: 0.0.40
codegen_flags: <defaults>
</compile_context>

<pallas_src>
import functools

import jax
import jax.numpy as jnp
from jax.experimental import pallas as pl
from jax.experimental.pallas import tpu as pltpu


# -----------------------------------------------------------------------------
# Pallas kernel: one batch tile of the dilated residual layer.
# -----------------------------------------------------------------------------
def _dilated_residual_kernel(x_ref, w3_ref, b_dil_ref, w1_ref, b1_ref, out_ref,
                             *, dilation):
    # x_ref     : (B_tile, C, T)  input, channels on sublanes / time on lanes
    # w3_ref    : (C, 3*C)        dilated conv weight, taps [t-d | t | t+d] packed on K (bf16)
    # b_dil_ref : (C, 1)          dilated conv bias (f32)
    # w1_ref    : (C, C)          1x1 conv weight (bf16)
    # b1_ref    : (C, 1)          1x1 conv bias (f32)
    # out_ref   : (B_tile, C, T)
    B, C, T = x_ref.shape
    d = dilation

    w3 = w3_ref[...]                         # (C, 3C) bf16
    w1 = w1_ref[...]                         # (C, C)  bf16
    b_dil = b_dil_ref[...]                   # (C, 1)  f32, broadcasts along lanes
    b_one = b1_ref[...]                      # (C, 1)  f32

    # Time-index mask used to zero the circularly wrapped lanes of the rolls.
    t_idx = jax.lax.broadcasted_iota(jnp.int32, (C, T), 1)

    for b in range(B):                       # static unroll over the small batch tile
        x = x_ref[b]                         # (C, T) f32

        if d < T:
            # x_m[:, t] = x[:, t-d] (zero left-pad), x_p[:, t] = x[:, t+d] (zero right-pad)
            x_m = jnp.where(t_idx >= d, pltpu.roll(x, d % T, axis=1), 0.0)
            x_p = jnp.where(t_idx < T - d, pltpu.roll(x, (T - d) % T, axis=1), 0.0)
        else:
            # dilation >= sequence length: the shifted taps only see zero padding.
            x_m = jnp.zeros_like(x)
            x_p = jnp.zeros_like(x)

        # Fused (3C, T) operand -> a single MXU matmul with K = 3C.
        x3 = jnp.concatenate([x_m, x, x_p], axis=0).astype(jnp.bfloat16)

        # Dilated conv (kernel size 3, padding=d, dilation=d) + bias + ReLU.
        h = jnp.dot(w3, x3, preferred_element_type=jnp.float32) + b_dil
        h = jnp.maximum(h, 0.0)

        # 1x1 conv + bias.
        r = jnp.dot(w1, h.astype(jnp.bfloat16),
                    preferred_element_type=jnp.float32) + b_one

        # TODO(synk): dropout is identity (eval mode); train mode would need RNG.
        out_ref[b] = (x + r).astype(out_ref.dtype)   # lane-dense (T) store


# -----------------------------------------------------------------------------
# Wrapper: NCT in, NCT out.  No transposes; batch-tiled grid.
# -----------------------------------------------------------------------------
def dilated_residual_forward(x_nct, params, *, dilation, batch_tile=None):
    N, C, T = x_nct.shape
    if batch_tile is None:
        batch_tile = next(bt for bt in range(min(N, 8), 0, -1) if N % bt == 0)
    assert N % batch_tile == 0, "batch_tile must divide N"

    kernel = functools.partial(_dilated_residual_kernel, dilation=dilation)

    return pl.pallas_call(
        kernel,
        out_shape=jax.ShapeDtypeStruct((N, C, T), jnp.float32),
        grid_spec=pltpu.PrefetchScalarGridSpec(
            num_scalar_prefetch=0,
            grid=(N // batch_tile,),
            in_specs=[
                pl.BlockSpec((batch_tile, C, T), lambda n: (n, 0, 0)),  # x (NCT)
                pl.BlockSpec((C, 3 * C), lambda n: (0, 0)),             # packed dilated weight
                pl.BlockSpec((C, 1), lambda n: (0, 0)),                 # dilated bias
                pl.BlockSpec((C, C), lambda n: (0, 0)),                 # 1x1 weight
                pl.BlockSpec((C, 1), lambda n: (0, 0)),                 # 1x1 bias
            ],
            out_specs=pl.BlockSpec((batch_tile, C, T), lambda n: (n, 0, 0)),
        ),
        compiler_params=pltpu.CompilerParams(
            dimension_semantics=("parallel",)),
    )(x_nct, params["w3"], params["b_dil"], params["w1"], params["b1"])


# -----------------------------------------------------------------------------
# Deterministic parameter init (PyTorch Conv1d shapes) + kernel-layout repack.
# -----------------------------------------------------------------------------
def init_params(key, channels):
    k1, k2, k3, k4 = jax.random.split(key, 4)

    def rnd(shape, kk):
        return 0.1 * jax.random.normal(kk, shape, dtype=jnp.float32)

    w_dil = rnd((channels, channels, 3), k1)   # Conv1d(C, C, 3) weight (O, I, K)
    b_dil = rnd((channels,), k2)
    w_1x1 = rnd((channels, channels, 1), k3)   # Conv1d(C, C, 1) weight (O, I, 1)
    b_1x1 = rnd((channels,), k4)

    torch_params = dict(w_dil=w_dil, b_dil=b_dil, w_1x1=w_1x1, b_1x1=b_1x1)

    # Kernel layout: taps packed along K (columns) in order [t-d | t | t+d];
    # weights stored in bf16 (MXU operand dtype), biases kept f32 as (C, 1).
    kern_params = {
        "w3": jnp.concatenate([w_dil[:, :, 0], w_dil[:, :, 1], w_dil[:, :, 2]],
                              axis=1).astype(jnp.bfloat16),   # (C, 3C)
        "b_dil": b_dil[:, None],                              # (C, 1) f32
        "w1": w_1x1[:, :, 0].astype(jnp.bfloat16),            # (C, C)
        "b1": b_1x1[:, None],                                 # (C, 1) f32
    }
    return torch_params, kern_params


# -----------------------------------------------------------------------------
# Pure-JAX reference (lax convs, NCT layout) for correctness check.
# -----------------------------------------------------------------------------
def _conv1d(x, w, b, *, dilation=1, padding=0):
    y = jax.lax.conv_general_dilated(
        x, w, window_strides=(1,), padding=[(padding, padding)],
        rhs_dilation=(dilation,), dimension_numbers=("NCH", "OIH", "NCH"),
        precision=jax.lax.Precision.HIGHEST)
    return y + b[None, :, None]


def reference_forward(x, tp, dilation, *, round_to_bf16=False):
    """round_to_bf16=True mimics the kernel's bf16 MXU operands (f32 accumulate)."""
    def rnd(v):
        return v.astype(jnp.bfloat16).astype(jnp.float32) if round_to_bf16 else v

    h = jax.nn.relu(_conv1d(rnd(x), rnd(tp["w_dil"]), tp["b_dil"],
                            dilation=dilation, padding=dilation))
    r = _conv1d(rnd(h), rnd(tp["w_1x1"]), tp["b_1x1"])
    return x + r


if __name__ == "__main__":
    # Small but representative shapes (time = 128 keeps the lane axis full).
    N, C, T, DILATION = 2, 32, 128, 2

    key = jax.random.PRNGKey(0)
    kx, kp = jax.random.split(key)
    x = jax.random.normal(kx, (N, C, T), dtype=jnp.float32)   # PyTorch NCT

    torch_params, kern_params = init_params(kp, C)

    out = dilated_residual_forward(x, kern_params, dilation=DILATION)
    out = jax.block_until_ready(out)
    assert out.shape == (N, C, T)

    # Tight check vs. a reference with bf16-rounded matmul operands (what the
    # MXU sees), and a loose sanity check vs. the full-f32 reference.
    ref_bf16 = reference_forward(x, torch_params, DILATION, round_to_bf16=True)
    ref_f32 = reference_forward(x, torch_params, DILATION)
    assert jnp.allclose(out, ref_bf16, atol=2e-3, rtol=2e-3), "mismatch vs bf16 reference"
    assert jnp.allclose(out, ref_f32, atol=1e-1, rtol=1e-1), "mismatch vs f32 reference"

    print("KERNEL_OK")
</pallas_src>

<mosaic_0001>
module attributes {stable_mosaic.version = 11 : i64} {
  func.func @_dilated_residual_kernel(%arg0: i32, %arg1: memref<2x32x128xf32, #tpu.memory_space<vmem>>, %arg2: memref<32x96xbf16, #tpu.memory_space<vmem>>, %arg3: memref<32x1xf32, #tpu.memory_space<vmem>>, %arg4: memref<32x32xbf16, #tpu.memory_space<vmem>>, %arg5: memref<32x1xf32, #tpu.memory_space<vmem>>, %arg6: memref<2x32x128xf32, #tpu.memory_space<vmem>>) attributes {dimension_semantics = [#tpu.dimension_semantics<parallel>], iteration_bounds = array<i64: 1>, scalar_prefetch = 0 : i64, scratch_operands = 0 : i64, tpu.core_type = #tpu.core_type<tc>, window_params = [{transform_indices = @transform_0, window_bounds = array<i64: 2, 32, 128>}, {pipeline_mode = #tpu.pipeline_mode<synchronous>, transform_indices = @transform_1, window_bounds = array<i64: 32, 96>}, {pipeline_mode = #tpu.pipeline_mode<synchronous>, transform_indices = @transform_2, window_bounds = array<i64: 32, 1>}, {pipeline_mode = #tpu.pipeline_mode<synchronous>, transform_indices = @transform_3, window_bounds = array<i64: 32, 32>}, {pipeline_mode = #tpu.pipeline_mode<synchronous>, transform_indices = @transform_4, window_bounds = array<i64: 32, 1>}, {transform_indices = @transform_5, window_bounds = array<i64: 2, 32, 128>}]} {
    %c0 = arith.constant 0 : index
    %c0_0 = arith.constant 0 : index
    %0 = vector.load %arg2[%c0, %c0_0] : memref<32x96xbf16, #tpu.memory_space<vmem>>, vector<32x96xbf16>
    %c0_1 = arith.constant 0 : index
    %c0_2 = arith.constant 0 : index
    %1 = vector.load %arg4[%c0_1, %c0_2] : memref<32x32xbf16, #tpu.memory_space<vmem>>, vector<32x32xbf16>
    %c0_3 = arith.constant 0 : index
    %c0_4 = arith.constant 0 : index
    %2 = vector.load %arg3[%c0_3, %c0_4] : memref<32x1xf32, #tpu.memory_space<vmem>>, vector<32x1xf32>
    %c0_5 = arith.constant 0 : index
    %c0_6 = arith.constant 0 : index
    %3 = vector.load %arg5[%c0_5, %c0_6] : memref<32x1xf32, #tpu.memory_space<vmem>>, vector<32x1xf32>
    %4 = tpu.iota {dimensions = array<i32: 1>} : vector<32x128xi32>
    %c0_7 = arith.constant 0 : index
    %c0_8 = arith.constant 0 : index
    %c0_9 = arith.constant 0 : index
    %5 = vector.load %arg1[%c0_7, %c0_8, %c0_9] : memref<2x32x128xf32, #tpu.memory_space<vmem>>, vector<1x32x128xf32>
    %6 = vector.shape_cast %5 : vector<1x32x128xf32> to vector<32x128xf32>
    %c2_i32 = arith.constant 2 : i32
    %7 = vector.broadcast %c2_i32 : i32 to vector<32x128xi32>
    %8 = arith.cmpi sge, %4, %7 : vector<32x128xi32>
    %c2_i32_10 = arith.constant 2 : i32
    %9 = tpu.dynamic_rotate %6 by %c2_i32_10 dim 1 : vector<32x128xf32>, i32 -> vector<32x128xf32>
    %cst = arith.constant 0.000000e+00 : f32
    %10 = vector.broadcast %cst : f32 to vector<32x128xf32>
    %11 = arith.select %8, %9, %10 : vector<32x128xi1>, vector<32x128xf32>
    %c126_i32 = arith.constant 126 : i32
    %12 = vector.broadcast %c126_i32 : i32 to vector<32x128xi32>
    %13 = arith.cmpi slt, %4, %12 : vector<32x128xi32>
    %c126_i32_11 = arith.constant 126 : i32
    %14 = tpu.dynamic_rotate %6 by %c126_i32_11 dim 1 : vector<32x128xf32>, i32 -> vector<32x128xf32>
    %cst_12 = arith.constant 0.000000e+00 : f32
    %15 = vector.broadcast %cst_12 : f32 to vector<32x128xf32>
    %16 = arith.select %13, %14, %15 : vector<32x128xi1>, vector<32x128xf32>
    %17 = tpu.concatenate %11, %6, %16 in 0 : vector<32x128xf32>, vector<32x128xf32>, vector<32x128xf32> -> vector<96x128xf32>
    %18 = arith.truncf %17 : vector<96x128xf32> to vector<96x128xbf16>
    %cst_13 = arith.constant dense<0.000000e+00> : vector<32x128xf32>
    %19 = tpu.matmul %0, %18, %cst_13 {dimension_numbers = #tpu.dot_dimension_numbers<[1], [0], [0], [1], [0, 0, 1, 1], [], []>} : vector<32x96xbf16>, vector<96x128xbf16>, vector<32x128xf32> -> vector<32x128xf32>
    %20 = vector.broadcast %2 : vector<32x1xf32> to vector<32x128xf32>
    %21 = arith.addf %19, %20 : vector<32x128xf32>
    %cst_14 = arith.constant 0.000000e+00 : f32
    %22 = vector.broadcast %cst_14 : f32 to vector<32x128xf32>
    %23 = arith.maximumf %21, %22 : vector<32x128xf32>
    %24 = arith.truncf %23 : vector<32x128xf32> to vector<32x128xbf16>
    %cst_15 = arith.constant dense<0.000000e+00> : vector<32x128xf32>
    %25 = tpu.matmul %1, %24, %cst_15 {dimension_numbers = #tpu.dot_dimension_numbers<[1], [0], [0], [1], [0, 0, 1, 1], [], []>} : vector<32x32xbf16>, vector<32x128xbf16>, vector<32x128xf32> -> vector<32x128xf32>
    %26 = vector.broadcast %3 : vector<32x1xf32> to vector<32x128xf32>
    %27 = arith.addf %25, %26 : vector<32x128xf32>
    %28 = arith.addf %6, %27 : vector<32x128xf32>
    %c0_16 = arith.constant 0 : index
    %c0_17 = arith.constant 0 : index
    %c0_18 = arith.constant 0 : index
    %29 = vector.load %arg6[%c0_16, %c0_17, %c0_18] : memref<2x32x128xf32, #tpu.memory_space<vmem>>, vector<1x32x128xf32>
    %30 = vector.shape_cast %29 : vector<1x32x128xf32> to vector<32x128xf32>
    %31 = vector.shape_cast %28 : vector<32x128xf32> to vector<1x32x128xf32>
    tpu.vector_store %arg6[%c0_16, %c0_17, %c0_18], %31 {strides = array<i32>} : memref<2x32x128xf32, #tpu.memory_space<vmem>>, vector<1x32x128xf32>,
    %c1 = arith.constant 1 : index
    %c0_19 = arith.constant 0 : index
    %c0_20 = arith.constant 0 : index
    %32 = vector.load %arg1[%c1, %c0_19, %c0_20] : memref<2x32x128xf32, #tpu.memory_space<vmem>>, vector<1x32x128xf32>
    %33 = vector.shape_cast %32 : vector<1x32x128xf32> to vector<32x128xf32>
    %c2_i32_21 = arith.constant 2 : i32
    %34 = vector.broadcast %c2_i32_21 : i32 to vector<32x128xi32>
    %35 = arith.cmpi sge, %4, %34 : vector<32x128xi32>
    %c2_i32_22 = arith.constant 2 : i32
    %36 = tpu.dynamic_rotate %33 by %c2_i32_22 dim 1 : vector<32x128xf32>, i32 -> vector<32x128xf32>
    %cst_23 = arith.constant 0.000000e+00 : f32
    %37 = vector.broadcast %cst_23 : f32 to vector<32x128xf32>
    %38 = arith.select %35, %36, %37 : vector<32x128xi1>, vector<32x128xf32>
    %c126_i32_24 = arith.constant 126 : i32
    %39 = vector.broadcast %c126_i32_24 : i32 to vector<32x128xi32>
    %40 = arith.cmpi slt, %4, %39 : vector<32x128xi32>
    %c126_i32_25 = arith.constant 126 : i32
    %41 = tpu.dynamic_rotate %33 by %c126_i32_25 dim 1 : vector<32x128xf32>, i32 -> vector<32x128xf32>
    %cst_26 = arith.constant 0.000000e+00 : f32
    %42 = vector.broadcast %cst_26 : f32 to vector<32x128xf32>
    %43 = arith.select %40, %41, %42 : vector<32x128xi1>, vector<32x128xf32>
    %44 = tpu.concatenate %38, %33, %43 in 0 : vector<32x128xf32>, vector<32x128xf32>, vector<32x128xf32> -> vector<96x128xf32>
    %45 = arith.truncf %44 : vector<96x128xf32> to vector<96x128xbf16>
    %cst_27 = arith.constant dense<0.000000e+00> : vector<32x128xf32>
    %46 = tpu.matmul %0, %45, %cst_27 {dimension_numbers = #tpu.dot_dimension_numbers<[1], [0], [0], [1], [0, 0, 1, 1], [], []>} : vector<32x96xbf16>, vector<96x128xbf16>, vector<32x128xf32> -> vector<32x128xf32>
    %47 = vector.broadcast %2 : vector<32x1xf32> to vector<32x128xf32>
    %48 = arith.addf %46, %47 : vector<32x128xf32>
    %cst_28 = arith.constant 0.000000e+00 : f32
    %49 = vector.broadcast %cst_28 : f32 to vector<32x128xf32>
    %50 = arith.maximumf %48, %49 : vector<32x128xf32>
    %51 = arith.truncf %50 : vector<32x128xf32> to vector<32x128xbf16>
    %cst_29 = arith.constant dense<0.000000e+00> : vector<32x128xf32>
    %52 = tpu.matmul %1, %51, %cst_29 {dimension_numbers = #tpu.dot_dimension_numbers<[1], [0], [0], [1], [0, 0, 1, 1], [], []>} : vector<32x32xbf16>, vector<32x128xbf16>, vector<32x128xf32> -> vector<32x128xf32>
    %53 = vector.broadcast %3 : vector<32x1xf32> to vector<32x128xf32>
    %54 = arith.addf %52, %53 : vector<32x128xf32>
    %55 = arith.addf %33, %54 : vector<32x128xf32>
    %c1_30 = arith.constant 1 : index
    %c0_31 = arith.constant 0 : index
    %c0_32 = arith.constant 0 : index
    %56 = vector.load %arg6[%c1_30, %c0_31, %c0_32] : memref<2x32x128xf32, #tpu.memory_space<vmem>>, vector<1x32x128xf32>
    %57 = vector.shape_cast %56 : vector<1x32x128xf32> to vector<32x128xf32>
    %58 = vector.shape_cast %55 : vector<32x128xf32> to vector<1x32x128xf32>
    tpu.vector_store %arg6[%c1_30, %c0_31, %c0_32], %58 {strides = array<i32>} : memref<2x32x128xf32, #tpu.memory_space<vmem>>, vector<1x32x128xf32>,
    return
  }
  func.func @transform_0(%arg0: i32) -> (i32, i32, i32) {
    %c0_i32 = arith.constant 0 : i32
    %c0_i32_0 = arith.constant 0 : i32
    %c0_i32_1 = arith.constant 0 : i32
    return %arg0, %c0_i32, %c0_i32_0 : i32, i32, i32
  }
  func.func @transform_1(%arg0: i32) -> (i32, i32) {
    %c0_i32 = arith.constant 0 : i32
    %c0_i32_0 = arith.constant 0 : i32
    %c0_i32_1 = arith.constant 0 : i32
    return %c0_i32, %c0_i32_0 : i32, i32
  }
  func.func @transform_2(%arg0: i32) -> (i32, i32) {
    %c0_i32 = arith.constant 0 : i32
    %c0_i32_0 = arith.constant 0 : i32
    %c0_i32_1 = arith.constant 0 : i32
    return %c0_i32, %c0_i32_0 : i32, i32
  }
  func.func @transform_3(%arg0: i32) -> (i32, i32) {
    %c0_i32 = arith.constant 0 : i32
    %c0_i32_0 = arith.constant 0 : i32
    %c0_i32_1 = arith.constant 0 : i32
    return %c0_i32, %c0_i32_0 : i32, i32
  }
  func.func @transform_4(%arg0: i32) -> (i32, i32) {
    %c0_i32 = arith.constant 0 : i32
    %c0_i32_0 = arith.constant 0 : i32
    %c0_i32_1 = arith.constant 0 : i32
    return %c0_i32, %c0_i32_0 : i32, i32
  }
  func.func @transform_5(%arg0: i32) -> (i32, i32, i32) {
    %c0_i32 = arith.constant 0 : i32
    %c0_i32_0 = arith.constant 0 : i32
    %c0_i32_1 = arith.constant 0 : i32
    return %arg0, %c0_i32, %c0_i32_0 : i32, i32, i32
  }
}

</mosaic_0001>

<bundles_post_ra>
// kernel: tpu_custom_call.1
= control target key start
LH: loop header
LB: loop body
LE: loop exit
PB: predicated region body
PF: predicated region fallthrough
CT: control target
= control target key end

     0   :  { %10 = vsyncpa [#allocation3], 0  ;;  %s932_s0 = inlined_call_operand.vmem [shape: f32[2,32,128], index: 0, kind: input, shape index: {}]   ;;  %s933_s1 = inlined_call_operand.hbm [shape: bf16[32,96], index: 1, kind: input, shape index: {}]   ;;  %s934_s2 = inlined_call_operand.vmem [shape: f32[32,1], index: 2, kind: input, shape index: {}]   ;;  %s935_s3 = inlined_call_operand.hbm [shape: bf16[32,32], index: 3, kind: input, shape index: {}]   ;;  %s936_s4 = inlined_call_operand.vmem [shape: f32[32,1], index: 4, kind: input, shape index: {}]   ;;  %s937_s5 = inlined_call_operand.hbm [shape: f32[2,32,128], index: 5, kind: output, shape index: {}]  }
   0x1   :  { %11 = vsyncpa [#allocation6], 0 }
   0x2   :  { %12 = vsyncpa [#allocation4], 0  ;;  %s696_s18 = smov [#allocation2]   ;;  %s624_s22 = scalar_lea.hbm %s933_s1, 256 }
   0x3   :  { %s20_s19 = sshll.u32 %s696_s18, 4  ;;  %p625_p0 = scmp.ne.s32.totalorder %s933_s1, %s624_s22  ;;  %s21_s19 = int_to_ptr.vmem [resolvable:$true] %s20_s19 }
   0x4   :  { %p628_p1 = scmp.lt.u32.totalorder %s624_s22, %s933_s1 }
   0x6   :  { %p630_p2 = pnand %p628_p1, %p625_p0 }
   0x8   :  { %633 = shalt.err (!%p630_p2)
}
   0x9   :  { %s634_s27 = scalar_lea.vmem %s21_s19, 256  ;;  %p639_p4 = scmp.lt.s32.totalorder %s21_s19, %s21_s19 }
   0xa   :  { %p635_p3 = scmp.ne.s32.totalorder %s21_s19, %s634_s27  ;;  %p640_p5 = scmp.lt.s32.totalorder %s634_s27, %s634_s27 }
   0xc   :  { %p641_p6 = por %p640_p5, %p639_p4 }
   0xe   :  { %p642_p7 = pnand %p641_p6, %p635_p3 }
  0x10   :  { %645 = shalt.err (!%p642_p7)
}
  0x11   :  { %s697_s28 = smov 64   ;;  %s698_s29 = smov 4  }
  0x12   :  { %26 = dma.hbm_to_vmem [thread:$0]  %s933_s1, 256, %s21_s19, [#allocation3], %s697_s28, %s697_s28, %s698_s29  }
  0x13   :  { %s699_s7 = smov [#allocation5]   ;;  %s646_s11 = scalar_lea.hbm %s935_s3, 256 }
  0x14   :  { %s34_s8 = sshll.u32 %s699_s7, 4  ;;  %p647_p8 = scmp.ne.s32.totalorder %s935_s3, %s646_s11  ;;  %s35_s8 = int_to_ptr.vmem [resolvable:$true] %s34_s8 }
  0x15   :  { %p650_p9 = scmp.lt.u32.totalorder %s646_s11, %s935_s3 }
  0x17   :  { %p652_p10 = pnand %p650_p9, %p647_p8 }
  0x19   :  { %655 = shalt.err (!%p652_p10)
}
  0x1a   :  { %s656_s16 = scalar_lea.vmem %s35_s8, 256  ;;  %p661_p12 = scmp.lt.s32.totalorder %s35_s8, %s35_s8 }
  0x1b   :  { %p657_p11 = scmp.ne.s32.totalorder %s35_s8, %s656_s16  ;;  %p662_p13 = scmp.lt.s32.totalorder %s656_s16, %s656_s16 }
  0x1d   :  { %p663_p0 = por %p662_p13, %p661_p12 }
  0x1f   :  { %p664_p1 = pnand %p663_p0, %p657_p11 }
  0x21   :  { %667 = shalt.err (!%p664_p1)
}
  0x22   :  { %40 = dma.hbm_to_vmem [thread:$0]  %s935_s3, 256, %s35_s8, [#allocation6], %s697_s28, %s697_s28, %s698_s29  }
  0x23   :  { %690 = dma.done.wait [#allocation3], 256  }
  0x24   :  { %691 = vsyncadd [#allocation3], 4294967040 }
  0x25   :  { %692 = dma.done.wait [#allocation6], 256  }
  0x26   :  { %693 = vsyncadd [#allocation6], 4294967040  ;;  %v763_v0 = vld [vmem:[%s932_s0] sm:$0xff]  ;;  %v768_v1 = vld [vmem:[%s932_s0 + $0x8] sm:$0xff]  ;;  %s700_s25 = smov 2   ;;  %s701_s26 = smov 126   ;;  %v66_v22 = vlaneseq }
  0x27   :  { %v773_v2 = vld [vmem:[%s932_s0 + $0x10] sm:$0xff]  ;;  %v578_v3 = vpack.i.bf16 %v768_v1, %v763_v0  ;;  %v780_v4 = vld [vmem:[%s932_s0 + $0x18] sm:$0xff]  ;;  %v784_v6 = vld [vmem:[#allocation2] sm:$0xff]   ;;  %vm134_vm0 = vcmask 785408   ;;  %v702_v9 = vmov 0   ;;  %v100_v34 = vpack.c.bf16 %v768_v1, %v763_v0 }
  0x28   :  { %v583_v5 = vpack.i.bf16 %v780_v4, %v773_v2  ;;  %532 = vmatprep.mubr.msk.bf16.mxu0 %vm134_vm0, %v784_v6  ;;  %v59_v7 = vld [vmem:[%s934_s2 + $0x8] sm:$0xff]  ;;  %v58_v8 = vld [vmem:[%s934_s2] sm:$0xff]  ;;  %599 = vset.pattern.permute.xlu1 %v702_v9  ;;  %v60_v10 = vld [vmem:[%s934_s2 + $0x10] sm:$0xff]  ;;  %v67_v23 = vand.u32 127, %v66_v22  ;;  %v101_v37 = vpack.c.bf16 %v780_v4, %v773_v2  ;;  %vm226_vm5 = vcmask 261120  }
  0x29   :  { %579 = vrot.lane.b32.xlu0 %v578_v3, %s700_s25  ;;  %589 = vrot.lane.b32.xlu1 %v578_v3, %s701_s26  ;;  %v61_v11 = vld [vmem:[%s934_s2 + $0x18] sm:$0xff]  ;;  %v803_v12 = vld [vmem:[%s932_s0 + $0x20] sm:$0xff]  ;;  %v621_v44 = vld [vmem:[#allocation2 + $0x8] sm:$0xff]  }
  0x2a   :  { %598 = vset.pattern.permute.xlu0 %v702_v9  ;;  %v808_v13 = vld [vmem:[%s932_s0 + $0x28] sm:$0xff]  ;;  %v813_v14 = vld [vmem:[%s932_s0 + $0x30] sm:$0xff]  ;;  %v818_v15 = vld [vmem:[%s932_s0 + $0x38] sm:$0xff]  ;;  %vm72_vm1 = vcmp.ge.s32.totalorder %v67_v23, 2  ;;  %vm85_vm3 = vcmp.lt.s32.totalorder %v67_v23, 126 }
  0x2b   :  { %v600_v16 = vpack.i.bf16 %v808_v13, %v803_v12  ;;  %v605_v17 = vpack.i.bf16 %v818_v15, %v813_v14  ;;  %v62_v18 = vld [vmem:[%s936_s4] sm:$0xff]  ;;  %v63_v19 = vld [vmem:[%s936_s4 + $0x8] sm:$0xff]  ;;  %v64_v20 = vld [vmem:[%s936_s4 + $0x10] sm:$0xff]  ;;  %v322_v22 = vpack.c.bf16 %v818_v15, %v813_v14 }
  0x2c   :  { %v65_v21 = vld [vmem:[%s936_s4 + $0x18] sm:$0xff]  ;;  %vm836_vm2 = vmpackc.low %vm72_vm1, %vm72_vm1  ;;  %v622_v45 = vld [vmem:[#allocation5] sm:$0xff]   ;;  %s703_s4 = smov [#allocation7]  }
  0x2d   :  { %584 = vrot.lane.b32.xlu0 %v583_v5, %s700_s25  ;;  %594 = vrot.lane.b32.xlu1 %v583_v5, %s701_s26  ;;  %vm852_vm4 = vmpackc.low %vm85_vm3, %vm85_vm3  ;;  %s443_s23 = sshll.u32 %s703_s4, 4  ;;  %s444_s23 = int_to_ptr.vmem [resolvable:$true] %s443_s23 }
  0x2e   :  { %540 = vmatprep.mubr.msk.bf16.mxu1 %vm226_vm5, %v622_v45  ;;  %s668_s3 = scalar_lea.vmem %s444_s23, 1024  ;;  %p673_p3 = scmp.lt.s32.totalorder %s444_s23, %s444_s23 }
  0x2f   :  { %p669_p2 = scmp.ne.s32.totalorder %s444_s23, %s668_s3  ;;  %p674_p4 = scmp.lt.s32.totalorder %s668_s3, %s668_s3 }
  0x31   :  { %111 = vperm.xlu1 %599, %v59_v7   ;;  %106 = vperm.xlu0 %598, %v58_v8   ;;  %p675_p5 = por %p674_p4, %p673_p3 }
  0x33   :  { %p676_p6 = pnand %p675_p5, %p669_p2 }
  0x35   :  { %116 = vperm.xlu1 %599, %v60_v10   ;;  %121 = vperm.xlu0 %598, %v61_v11  }
  0x39   :  { %601 = vrot.lane.b32.xlu1 %v600_v16, %s700_s25  ;;  %606 = vrot.lane.b32.xlu0 %v605_v17, %s700_s25 }
  0x3d   :  { %611 = vrot.lane.b32.xlu1 %v600_v16, %s701_s26  ;;  %616 = vrot.lane.b32.xlu0 %v605_v17, %s701_s26  ;;  %v879_v16 = vld [vmem:[#allocation5 + $0x8] sm:$0xff]  }
  0x41   :  { %198 = vperm.xlu1 %599, %v62_v18   ;;  %203 = vperm.xlu0 %598, %v63_v19   ;;  %v321_v18 = vpack.c.bf16 %v808_v13, %v803_v12 }
  0x45   :  { %208 = vperm.xlu1 %599, %v64_v20   ;;  %213 = vperm.xlu0 %598, %v65_v21  }
  0x9b   :  { %v580_v24 = vpop.permute.xlu0 %579  ;;  %v590_v32 = vpop.permute.xlu1 %589 }
  0x9c   :  { %v582_v25 = vunpack.i.h.bf16 %v580_v24  ;;  %v581_v26 = vunpack.i.l.bf16 %v580_v24  ;;  %v592_v35 = vunpack.i.h.bf16 %v590_v32  ;;  %v591_v36 = vunpack.i.l.bf16 %v590_v32 }
  0x9e   :  { %v459_v28 = vpack.c.bf16 %v582_v25, %v581_v26  ;;  %v465_v39 = vpack.c.bf16 %v592_v35, %v591_v36 }
  0x9f   :  { %v585_v29 = vpop.permute.xlu0 %584  ;;  %v595_v38 = vpop.permute.xlu1 %594 }
  0xa0   :  { %v587_v30 = vunpack.i.h.bf16 %v585_v29  ;;  %v586_v31 = vunpack.i.l.bf16 %v585_v29  ;;  %520 = vmatprep.subr.msk.bf16.mxu0 %vm836_vm2, %v459_v28  ;;  %v597_v40 = vunpack.i.h.bf16 %v595_v38  ;;  %v596_v41 = vunpack.i.l.bf16 %v595_v38 }
  0xa1   :  { %521 = vmatpush3.bf16.msk.msra.mxu0 %vm836_vm2, %v459_v28 }
  0xa2   :  { %v462_v33 = vpack.c.bf16 %v587_v30, %v586_v31  ;;  %v468_v43 = vpack.c.bf16 %v597_v40, %v596_v41 }
  0xa4   :  { %522 = vmatprep.subr.msk.bf16.mxu0 %vm836_vm2, %v462_v33 }
  0xa5   :  { %523 = vmatpush3.bf16.msk.msra.mxu0 %vm836_vm2, %v462_v33 }
  0xa6   :  { %524 = vmatprep.subr.bf16.mxu0 %v100_v34 }
  0xa9   :  { %525 = vmatpush3.bf16.msra.mxu0 %v100_v34 }
  0xaa   :  { %526 = vmatprep.subr.bf16.mxu0 %v101_v37 }
  0xad   :  { %527 = vmatpush3.bf16.msra.mxu0 %v101_v37 }
  0xae   :  { %528 = vmatprep.subr.msk.bf16.mxu0 %vm852_vm4, %v465_v39 }
  0xb0   :  { %v867_v46 = vpop.permute.xlu1 %111  ;;  %v869_v47 = vpop.permute.xlu0 %106 }
  0xb1   :  { %529 = vmatpush3.bf16.msk.msra.mxu0 %vm852_vm4, %v465_v39 }
  0xb2   :  { %530 = vmatprep.subr.msk.bf16.mxu0 %vm852_vm4, %v468_v43 }
  0xb4   :  { %v871_v48 = vpop.permute.xlu1 %116  ;;  %v874_v52 = vpop.permute.xlu0 %121 }
  0xb5   :  { %531 = vmatpush3.bf16.msk.msra.mxu0 %vm852_vm4, %v468_v43 }
  0xb8   :  { %533 = vmatmul.mubr.msk.bf16.vlgmr.msra.gmra.mrb[0].mxu0 %vm134_vm0, %v621_v44  ;;  %v602_v62 = vpop.permute.xlu1 %601  ;;  %v607_v8 = vpop.permute.xlu0 %606 }
  0xb9   :  { %564 = vmatprep.mubr.msk.bf16.mxu0 %vm226_vm5, %v622_v45  ;;  %v604_v3 = vunpack.i.h.bf16 %v602_v62  ;;  %v603_v5 = vunpack.i.l.bf16 %v602_v62  ;;  %v609_v10 = vunpack.i.h.bf16 %v607_v8  ;;  %v608_v11 = vunpack.i.l.bf16 %v607_v8 }
  0xbb   :  { %v481_v9 = vpack.c.bf16 %v604_v3, %v603_v5  ;;  %v484_v17 = vpack.c.bf16 %v609_v10, %v608_v11 }
  0xbc   :  { %v612_v19 = vpop.permute.xlu1 %611  ;;  %v617_v23 = vpop.permute.xlu0 %616 }
  0xbd   :  { %v614_v20 = vunpack.i.h.bf16 %v612_v19  ;;  %v613_v21 = vunpack.i.l.bf16 %v612_v19  ;;  %v618_v25 = vunpack.i.l.bf16 %v617_v23 }
  0xbf   :  { %v487_v24 = vpack.c.bf16 %v614_v20, %v613_v21 }
  0xc0   :  { %v199_v27 = vpop.permute.xlu1 %198  ;;  %v204_v28 = vpop.permute.xlu0 %203 }
  0xc4   :  { %v209_v29 = vpop.permute.xlu1 %208  ;;  %v214_v33 = vpop.permute.xlu0 %213 }
 0x18b   :  { %v534_v49 = vpop.f32.mrb[0].mxu0 }
 0x18c   :  { %v184_v50 = vadd.f32 %v534_v49, %v871_v48  ;;  %v175_v51 = vpop.f32.mrb[1].mxu0 }
 0x18d   :  { %v176_v53 = vadd.f32 %v175_v51, %v869_v47  ;;  %v535_v54 = vpop.f32.mrb[2].mxu0 }
 0x18e   :  { %v187_v55 = vadd.f32 %v535_v54, %v874_v52  ;;  %v178_v56 = vpop.f32.mrb[3].mxu0  ;;  %v192_v58 = vmax.f32 %v184_v50, 0.0 }
 0x18f   :  { %v179_v57 = vadd.f32 %v178_v56, %v867_v46  ;;  %v190_v60 = vmax.f32 %v176_v53, 0.0 }
 0x190   :  { %v193_v59 = vmax.f32 %v187_v55, 0.0 }
 0x191   :  { %v191_v61 = vmax.f32 %v179_v57, 0.0 }
 0x192   :  { %v195_v63 = vpack.c.bf16 %v193_v59, %v192_v58 }
 0x193   :  { %v194_v7 = vpack.c.bf16 %v191_v61, %v190_v60 }
 0x195   :  { %536 = vmatprep.subr.bf16.mxu1 %v194_v7 }
 0x196   :  { %537 = vmatpush3.bf16.msra.mxu1 %v194_v7 }
 0x197   :  { %538 = vmatprep.subr.bf16.mxu1 %v195_v63 }
 0x19a   :  { %539 = vmatpush3.bf16.msra.mxu1 %v195_v63 }
 0x19b   :  { %544 = vmatprep.subr.msk.bf16.mxu1 %vm836_vm2, %v481_v9 }
 0x19d   :  { %541 = vmatmul.mubr.msk.bf16.vlgmr.msra.gmra.mrb[0].mxu1 %vm226_vm5, %v879_v16 }
 0x19e   :  { %545 = vmatpush3.bf16.msk.msra.mxu1 %vm836_vm2, %v481_v9  ;;  %556 = vmatprep.mubr.msk.bf16.mxu1 %vm134_vm0, %v784_v6  ;;  %v619_v6 = vunpack.i.h.bf16 %v617_v23 }
 0x19f   :  { %546 = vmatprep.subr.msk.bf16.mxu1 %vm836_vm2, %v484_v17 }
 0x1a0   :  { %v490_v26 = vpack.c.bf16 %v619_v6, %v618_v25 }
 0x1a2   :  { %547 = vmatpush3.bf16.msk.msra.mxu1 %vm836_vm2, %v484_v17 }
 0x1a3   :  { %548 = vmatprep.subr.bf16.mxu1 %v321_v18 }
 0x1a6   :  { %549 = vmatpush3.bf16.msra.mxu1 %v321_v18 }
 0x1a7   :  { %550 = vmatprep.subr.bf16.mxu1 %v322_v22 }
 0x1aa   :  { %551 = vmatpush3.bf16.msra.mxu1 %v322_v22 }
 0x1ab   :  { %552 = vmatprep.subr.msk.bf16.mxu1 %vm852_vm4, %v487_v24 }
 0x1ae   :  { %553 = vmatpush3.bf16.msk.msra.mxu1 %vm852_vm4, %v487_v24 }
 0x1af   :  { %554 = vmatprep.subr.msk.bf16.mxu1 %vm852_vm4, %v490_v26 }
 0x1b2   :  { %555 = vmatpush3.bf16.msk.msra.mxu1 %vm852_vm4, %v490_v26 }
 0x1b5   :  { %557 = vmatmul.mubr.msk.bf16.vlgmr.msra.gmra.mrb[4].mxu1 %vm134_vm0, %v621_v44 }
 0x270   :  { %v542_v30 = vpop.f32.mrb[0].mxu1 }
 0x271   :  { %v276_v31 = vadd.f32 %v542_v30, %v209_v29  ;;  %v267_v32 = vpop.f32.mrb[1].mxu1 }
 0x272   :  { %v268_v34 = vadd.f32 %v267_v32, %v199_v27  ;;  %v543_v35 = vpop.f32.mrb[2].mxu1 }
 0x273   :  { %v284_v36 = vadd.f32 %v276_v31, %v773_v2  ;;  %v279_v37 = vadd.f32 %v543_v35, %v214_v33  ;;  %v270_v38 = vpop.f32.mrb[3].mxu1 }
 0x274   :  { %v282_v39 = vadd.f32 %v268_v34, %v763_v0  ;;  %v271_v40 = vadd.f32 %v270_v38, %v204_v28 }
 0x275   :  { %288 = vst [vmem:[#allocation7 + $0x10] sm:$0xff] %v284_v36  ;;  %v285_v41 = vadd.f32 %v279_v37, %v780_v4 }
 0x276   :  { %286 = vst [vmem:[#allocation7] sm:$0xff] %v282_v39  ;;  %v283_v42 = vadd.f32 %v271_v40, %v768_v1 }
 0x277   :  { %289 = vst [vmem:[#allocation7 + $0x18] sm:$0xff] %v285_v41 }
 0x278   :  { %287 = vst [vmem:[#allocation7 + $0x8] sm:$0xff] %v283_v42 }
 0x288   :  { %v558_v43 = vpop.f32.mrb[4].mxu1 }
 0x289   :  { %v368_v44 = vadd.f32 %v558_v43, %v871_v48  ;;  %v359_v45 = vpop.f32.mrb[5].mxu1 }
 0x28a   :  { %v360_v49 = vadd.f32 %v359_v45, %v869_v47  ;;  %v559_v2 = vpop.f32.mrb[6].mxu1 }
 0x28b   :  { %v371_v50 = vadd.f32 %v559_v2, %v874_v52  ;;  %v362_v51 = vpop.f32.mrb[7].mxu1  ;;  %v376_v53 = vmax.f32 %v368_v44, 0.0 }
 0x28c   :  { %v363_v0 = vadd.f32 %v362_v51, %v867_v46  ;;  %v374_v4 = vmax.f32 %v360_v49, 0.0 }
 0x28d   :  { %v377_v54 = vmax.f32 %v371_v50, 0.0 }
 0x28e   :  { %v375_v55 = vmax.f32 %v363_v0, 0.0 }
 0x28f   :  { %v379_v56 = vpack.c.bf16 %v377_v54, %v376_v53 }
 0x290   :  { %v378_v1 = vpack.c.bf16 %v375_v55, %v374_v4 }
 0x292   :  { %560 = vmatprep.subr.bf16.mxu0 %v378_v1 }
 0x293   :  { %561 = vmatpush3.bf16.msra.mxu0 %v378_v1 }
 0x294   :  { %562 = vmatprep.subr.bf16.mxu0 %v379_v56 }
 0x297   :  { %563 = vmatpush3.bf16.msra.mxu0 %v379_v56 }
 0x29a   :  { %565 = vmatmul.mubr.msk.bf16.vlgmr.msra.gmra.mrb[4].mxu0 %vm226_vm5, %v879_v16 }
 0x36d   :  { %v566_v47 = vpop.f32.mrb[4].mxu0 }
 0x36e   :  { %v423_v48 = vadd.f32 %v566_v47, %v209_v29  ;;  %v414_v57 = vpop.f32.mrb[5].mxu0 }
 0x36f   :  { %v415_v52 = vadd.f32 %v414_v57, %v199_v27  ;;  %v567_v58 = vpop.f32.mrb[6].mxu0 }
 0x370   :  { %v431_v46 = vadd.f32 %v813_v14, %v423_v48  ;;  %v426_v59 = vadd.f32 %v567_v58, %v214_v33  ;;  %v417_v60 = vpop.f32.mrb[7].mxu0 }
 0x371   :  { %v429_v61 = vadd.f32 %v803_v12, %v415_v52  ;;  %v418_v62 = vadd.f32 %v417_v60, %v204_v28 }
 0x372   :  { %436 = vst [vmem:[#allocation7 + $0x30] sm:$0xff] %v431_v46  ;;  %v432_v63 = vadd.f32 %v818_v15, %v426_v59 }
 0x373   :  { %434 = vst [vmem:[#allocation7 + $0x20] sm:$0xff] %v429_v61  ;;  %v430_v3 = vadd.f32 %v808_v13, %v418_v62 }
 0x374   :  { %437 = vst [vmem:[#allocation7 + $0x38] sm:$0xff] %v432_v63 }
 0x375   :  { %435 = vst [vmem:[#allocation7 + $0x28] sm:$0xff] %v430_v3 }
 0x376   :  { %679 = shalt.err (!%p676_p6)
}
 0x377   :  { %s680_s26 = scalar_lea.hbm %s937_s5, 1024 }
 0x378   :  { %p681_p7 = scmp.ne.s32.totalorder %s937_s5, %s680_s26  ;;  %p684_p8 = scmp.lt.u32.totalorder %s680_s26, %s937_s5 }
 0x37a   :  { %p686_p9 = pnand %p684_p8, %p681_p7 }
 0x37c   :  { %689 = shalt.err (!%p686_p9)
}
 0x37d   :  { %s704_s6 = smov 128   ;;  %s705_s7 = smov 8  }
 0x37e   :  { %449 = dma.vmem_to_hbm [thread:$0]  %s444_s23, 1024, %s937_s5, [#allocation4], %s704_s6, %s704_s6, %s705_s7  }
 0x37f   :  { %694 = dma.done.wait [#allocation4], 1024  }
 0x380   :  { %695 = vsyncadd [#allocation4], 4294966272 }
 0x381   :  { %453 = vsyncpa [#allocation3], 1 }
 0x382   :  { %454 = vsyncpa [#allocation6], 1 }
 0x383   :  { %455 = vsyncpa [#allocation4], 1 }

</bundles_post_ra>
